<compile_context>
chip_gen: v5e
topology: v5e:2x2
jax: 0.10.0
libtpu: 0.0.40
codegen_flags: <defaults>
</compile_context>

<pallas_src>
import math
import functools

import jax
import jax.numpy as jnp
from jax import lax
from jax.experimental import pallas as pl
from jax.experimental.pallas import tpu as pltpu

_EPS_NORM = 1e-12   # F.normalize eps
_EPS_BN = 1e-5      # BatchNorm2d eps


def _dropout_scale(p):
    if p <= 0.0:
        return 1.0
    if p >= 1.0:
        return 0.0   # torch F.dropout with p=1 (training) zeroes everything
    # TODO(synk): stochastic dropout (0 < p < 1) would need in-kernel PRNG; not needed for
    # the reference instantiation which uses dropout_p == 1.
    raise NotImplementedError("only dropout_p == 0 or dropout_p >= 1 is supported")


def _bn_relu(x, gamma, beta):
    """Training-mode BatchNorm (exact batch stats over the full token slab) + ReLU."""
    mu = jnp.mean(x, axis=0, keepdims=True)
    d = x - mu
    var = jnp.mean(d * d, axis=0, keepdims=True)
    return jnp.maximum(d * (gamma * lax.rsqrt(var + _EPS_BN)) + beta, 0.0)


def _l2_normalize(x, axis):
    """F.normalize(p=2): x / max(||x||, eps)."""
    n = jnp.sum(x * x, axis=axis, keepdims=True)
    return x * lax.rsqrt(jnp.maximum(n, _EPS_NORM * _EPS_NORM))


# --------------------------------------------------------------------------------------
# Single fused kernel: q/k/v conv blocks (stacked, v-path only) -> per-channel spatial
# attention (channels-last, VPU) -> out conv block (project/BN/ReLU/conv/unproject_v
# residual + gram/BN/fused reduce-unproject_qk).  Everything on [N = B*H*W, C] tokens.
# --------------------------------------------------------------------------------------
def _fused_model_kernel(x1_ref, x2_ref, m_ref,
                        wp_q_ref, wp_kv_ref, g1_qkv_ref, b1_qkv_ref,
                        wc_qkv_ref, wuv_qkv_ref,
                        wp_ot_ref, wp_ob_ref, g1_o_ref, b1_o_ref, wc_o_ref,
                        g2_o_ref, b2_o_ref, wruqk_ref, bruqk_ref, wuv_o_ref,
                        out_ref,
                        *, batch, height, width, cv, attn_scale, drop_scale,
                        apply_drop, live):
    hw = height * width

    x1 = x1_ref[...]                                                     # [N, 64]
    x2 = x2_ref[...]                                                     # [N, 64]
    s_q = x1 + x2                                                        # q-block & out-block input

    if live:
        # ---- q / k / v conv blocks stacked on the channel axis (3 * depth = 96) ----
        # project (1x1 conv, no bias); k and v share the same input (x2 + x2).
        h_q = jnp.dot(s_q, wp_q_ref[...], preferred_element_type=jnp.float32)        # [N, 32]
        h_kv = jnp.dot(x2 + x2, wp_kv_ref[...], preferred_element_type=jnp.float32)  # [N, 64]
        h_all = jnp.concatenate([h_q, h_kv], axis=1)                                 # [N, 96]
        hb = _bn_relu(h_all, g1_qkv_ref[...], b1_qkv_ref[...])                       # BN + ReLU (exact, per-channel)
        xvp = jnp.dot(hb, wc_qkv_ref[...], preferred_element_type=jnp.float32)       # conv (block-diag)  [N, 96]
        uv = jnp.dot(xvp, wuv_qkv_ref[...], preferred_element_type=jnp.float32)      # unproject_v (block-diag)
        # TODO(synk): reference residual v + x2 is channel-inconsistent (32 vs 64); add the
        # leading x2 channels.
        x2_lead = x2[:, :cv]
        qkv_v = uv + jnp.concatenate([x2_lead, x2_lead, x2_lead], axis=1)            # [N, 96]

        # ---- outer attention: per-channel spatial gram, channels-last (C in lanes) ----
        z_parts = []
        for b in range(batch):
            lo = b * hw
            blk = qkv_v[lo:lo + hw, :]                                   # [HW, 96]
            qb = blk[:, 0 * cv:1 * cv].reshape(height, width, cv)        # [H, W, C]
            kb = blk[:, 1 * cv:2 * cv].reshape(height, width, cv)
            vb = blk[:, 2 * cv:3 * cv].reshape(height, width, cv)
            mb = m_ref[lo:lo + hw, :].reshape(height, width, 1)          # [H, W, 1]
            # w[i, j, c] = sum_h q[h, i, c] * k[h, j, c]   (== reference q^T k per channel)
            w = jnp.sum(qb[:, :, None, :] * kb[:, None, :, :], axis=0)   # [W, W, C]
            w = _l2_normalize(w, axis=1)                                 # F.normalize(dim=3)
            w = w * (attn_scale * drop_scale)                            # / sqrt(channels) [+ dropout]
            w = w * mb                                                   # mask, broadcast over C
            # z[i, j, c] = sum_m w[i, m, c] * v[m, j, c]
            z = jnp.sum(w[:, :, None, :] * vb[None, :, :, :], axis=1)    # [W, W, C]
            z = _l2_normalize(z, axis=1)                                 # F.normalize(dim=3)
            z_parts.append(z.reshape(hw, cv))
        z_tok = jnp.concatenate(z_parts, axis=0)                         # [N, 32]

    # ---- out conv block on cat([x1 + x2, z]) ----
    # TODO(synk): reference out_conv.project is Conv2d(64, 32) but its input has 96 channels
    # (and the in-block residual is x2 against 96 channels); widened project / residual added
    # into the leading shared channels, i.e. cat([x1 + x2, z]).
    proj = jnp.dot(s_q, wp_ot_ref[...], preferred_element_type=jnp.float32)          # [N, 32]
    if live:
        proj = proj + jnp.dot(z_tok, wp_ob_ref[...], preferred_element_type=jnp.float32)
    hb_o = _bn_relu(proj, g1_o_ref[...], b1_o_ref[...])
    xvp_o = jnp.dot(hb_o, wc_o_ref[...], preferred_element_type=jnp.float32)          # [N, 32]
    v_out = jnp.dot(xvp_o, wuv_o_ref[...], preferred_element_type=jnp.float32) + x2   # [N, 64]

    if live:
        # TODO(synk): reference slices x_v_proj[:, :qk_depth] / [:, qk_depth:], which is
        # full / empty here; both branches use x_v_proj.
        qk = xvp_o
        if apply_drop:
            qk = qk * drop_scale
            # TODO(synk): reference would also multiply by (1 - mask), but out_conv is called
            # with mask=None (reference crashes there); mask term skipped.
        qk_n = _l2_normalize(qk, axis=-1)                                 # F.normalize(qk, dim=2)
        g_parts = []
        for b in range(batch):
            lo = b * hw
            qb = qk_n[lo:lo + hw, :]                                      # [HW, 32]
            vb = xvp_o[lo:lo + hw, :]
            g = lax.dot_general(qb, vb, (((0,), (0,)), ((), ())),
                                preferred_element_type=jnp.float32)       # [32, 32] = qk^T @ v
            g = _l2_normalize(g, axis=-1)                                 # F.normalize(w, dim=2)
            # TODO(synk): reference reshapes the gram straight to (B, qk_depth, H, W) which is
            # shape-inconsistent; read it back onto the token grid via qb @ g instead.
            g_parts.append(jnp.dot(qb, g, preferred_element_type=jnp.float32))
        gram_tok = jnp.concatenate(g_parts, axis=0)                       # [N, 32]
        gb = _bn_relu(gram_tok, g2_o_ref[...], b2_o_ref[...])
        # reduce conv + unproject_qk fused: (gb @ Wr + br) @ Wuqk == gb @ (Wr@Wuqk) + br@Wuqk
        y_out = jnp.dot(gb, wruqk_ref[...], preferred_element_type=jnp.float32) + bruqk_ref[...]
        if apply_drop:
            y_out = y_out * drop_scale
    else:
        # dropout_p >= 1 zeroes the attention weights and both dropout'd y paths, so z == 0
        # and y == 0 exactly; all of that work is skipped statically.
        y_out = jnp.zeros_like(v_out)

    out_ref[...] = jnp.concatenate([v_out, y_out], axis=1)                # [N, 128], lane-dense


# --------------------------------------------------------------------------------------
# Parameters (deterministic, synthetic; pre-transposed / pre-fused / block-diagonal).
# --------------------------------------------------------------------------------------
def init_model_params(key):
    ks = jax.random.split(key, 15)
    s = 0.05
    f32 = jnp.float32
    nrm = lambda k, sh: s * jax.random.normal(k, sh, f32)

    C = 64        # model channel count
    d = 32        # Conv depth = max(qk_depth, v_depth) // 2 for every block
    cv_qkv = 32   # v_depth of q/k/v blocks
    cv_out = 64   # v_depth of out block

    # q/k/v blocks (Conv(64, 32)) — per-block raw weights, stored pre-transposed [cin, cout]
    wp_q, wp_k, wp_v = nrm(ks[0], (C, d)), nrm(ks[1], (C, d)), nrm(ks[2], (C, d))
    wc_q, wc_k, wc_v = nrm(ks[3], (d, d)), nrm(ks[4], (d, d)), nrm(ks[5], (d, d))
    wuv_q, wuv_k, wuv_v = (nrm(ks[6], (d, cv_qkv)), nrm(ks[7], (d, cv_qkv)),
                           nrm(ks[8], (d, cv_qkv)))

    # out block (Conv(64, 64), depth = 32)
    # TODO(synk): declared out_conv.project is Conv2d(64, 32); widened to 96 inputs so it
    # accepts cat([x1, z]).
    wp_o = nrm(ks[9], (C + cv_qkv, d))
    wc_o = nrm(ks[10], (d, d))
    wr_o, br_o = nrm(ks[11], (d, cv_out)), nrm(ks[12], (1, cv_out))
    # TODO(synk): declared unproject_qk is Conv2d(depth, qk_depth); widened to v_depth inputs
    # so unproject_qk(reduce(w)) is channel-consistent.
    wuqk_o = nrm(ks[13], (cv_out, C))
    wuv_o = nrm(ks[14], (d, cv_out))

    def blkdiag(mats):
        rows = sum(m.shape[0] for m in mats)
        cols = sum(m.shape[1] for m in mats)
        out = jnp.zeros((rows, cols), f32)
        r = c = 0
        for m in mats:
            out = out.at[r:r + m.shape[0], c:c + m.shape[1]].set(m)
            r += m.shape[0]
            c += m.shape[1]
        return out

    return {
        # q/k/v stacked (k and v share the 2*x2 input; BN is per-channel so concatenated
        # gamma/beta give exact statistics)
        "wp_q": wp_q,
        "wp_kv": jnp.concatenate([wp_k, wp_v], axis=1),        # [64, 64]
        "g1_qkv": jnp.ones((1, 3 * d), f32),
        "b1_qkv": jnp.zeros((1, 3 * d), f32),
        "wc_qkv": blkdiag([wc_q, wc_k, wc_v]),                 # [96, 96]
        "wuv_qkv": blkdiag([wuv_q, wuv_k, wuv_v]),             # [96, 96]
        # out block (project split so the cat([x1+x2, z]) concat becomes two matmuls)
        "wp_ot": wp_o[:C], "wp_ob": wp_o[C:],
        "g1_o": jnp.ones((1, d), f32), "b1_o": jnp.zeros((1, d), f32),
        "wc_o": wc_o,
        "g2_o": jnp.ones((1, d), f32), "b2_o": jnp.zeros((1, d), f32),
        "wruqk_o": wr_o @ wuqk_o,                              # fused reduce -> unproject_qk
        "bruqk_o": br_o @ wuqk_o,
        "wuv_o": wuv_o,
    }


def model_forward(params, x1, x2, mask, dropout_p):
    B, C, H, W = x1.shape
    N = B * H * W
    assert H == W, "reference matmul(w, v) is only shape-consistent for square spatial maps"

    drop_scale = _dropout_scale(dropout_p)
    apply_drop = dropout_p > 0.0
    live = (not apply_drop) or (drop_scale != 0.0)

    def to_tok(t):   # NCHW -> channels-last tokens [N, C]
        return jnp.transpose(t, (0, 2, 3, 1)).reshape(N, t.shape[1])

    def to_img(t):   # tokens [N, C] -> NCHW
        return jnp.transpose(t.reshape(B, H, W, t.shape[1]), (0, 3, 1, 2))

    x1_tok = to_tok(x1)
    x2_tok = to_tok(x2)
    mask_tok = to_tok(mask.astype(jnp.float32))

    p = params
    cv = p["wuv_qkv"].shape[1] // 3   # static attention channel count (32)

    kernel = functools.partial(
        _fused_model_kernel, batch=B, height=H, width=W, cv=cv,
        attn_scale=1.0 / math.sqrt(C),           # reference: / sqrt(x1.size(1))
        drop_scale=drop_scale, apply_drop=apply_drop, live=live)

    operands = (x1_tok, x2_tok, mask_tok,
                p["wp_q"], p["wp_kv"], p["g1_qkv"], p["b1_qkv"],
                p["wc_qkv"], p["wuv_qkv"],
                p["wp_ot"], p["wp_ob"], p["g1_o"], p["b1_o"], p["wc_o"],
                p["g2_o"], p["b2_o"], p["wruqk_o"], p["bruqk_o"], p["wuv_o"])

    def full_spec(a):
        shape = a.shape
        return pl.BlockSpec(shape, lambda i, _s=shape: (0,) * len(_s))

    # NOTE: BN batch statistics are exact because the whole N-token slab is one tile;
    # do not tile over N without reworking the BN stages.
    out_slab = pl.pallas_call(
        kernel,
        out_shape=jax.ShapeDtypeStruct((N, 2 * C), jnp.float32),
        grid=(1,),
        in_specs=[full_spec(a) for a in operands],
        out_specs=pl.BlockSpec((N, 2 * C), lambda i: (0, 0)),
        compiler_params=pltpu.CompilerParams(dimension_semantics=("arbitrary",)),
    )(*operands)

    return to_img(out_slab[:, :C]), to_img(out_slab[:, C:])


if __name__ == "__main__":
    key = jax.random.PRNGKey(0)
    kp, k1, k2, km = jax.random.split(key, 4)

    B, C, H, W = 2, 64, 8, 8
    params = init_model_params(kp)
    x1 = jax.random.normal(k1, (B, C, H, W), jnp.float32)
    x2 = jax.random.normal(k2, (B, C, H, W), jnp.float32)
    mask = (jax.random.uniform(km, (B, 1, H, W)) > 0.5).astype(jnp.float32)

    fwd = jax.jit(model_forward, static_argnames=("dropout_p",))

    # Faithful to the script's global `dropout_p = 1` (dropout with p=1 zeroes its input).
    out_v, out_y = fwd(params, x1, x2, mask, dropout_p=1.0)
    # Also exercise the full (non-degenerate) path with dropout disabled.
    out_v0, out_y0 = fwd(params, x1, x2, mask, dropout_p=0.0)

    jax.block_until_ready((out_v, out_y, out_v0, out_y0))
    assert out_v.shape == (B, 64, H, W) and out_y.shape == (B, 64, H, W)
    assert out_v0.shape == (B, 64, H, W) and out_y0.shape == (B, 64, H, W)
    assert bool(jnp.isfinite(out_v).all()) and bool(jnp.isfinite(out_y).all())
    assert bool(jnp.isfinite(out_v0).all()) and bool(jnp.isfinite(out_y0).all())
    print("KERNEL_OK")
</pallas_src>

<mosaic_0001>
module attributes {stable_mosaic.version = 11 : i64} {
  func.func @_fused_model_kernel(%arg0: i32, %arg1: memref<128x64xf32, #tpu.memory_space<vmem>>, %arg2: memref<128x64xf32, #tpu.memory_space<vmem>>, %arg3: memref<128x1xf32, #tpu.memory_space<vmem>>, %arg4: memref<64x32xf32, #tpu.memory_space<vmem>>, %arg5: memref<64x64xf32, #tpu.memory_space<vmem>>, %arg6: memref<1x96xf32, #tpu.memory_space<vmem>>, %arg7: memref<1x96xf32, #tpu.memory_space<vmem>>, %arg8: memref<96x96xf32, #tpu.memory_space<vmem>>, %arg9: memref<96x96xf32, #tpu.memory_space<vmem>>, %arg10: memref<64x32xf32, #tpu.memory_space<vmem>>, %arg11: memref<32x32xf32, #tpu.memory_space<vmem>>, %arg12: memref<1x32xf32, #tpu.memory_space<vmem>>, %arg13: memref<1x32xf32, #tpu.memory_space<vmem>>, %arg14: memref<32x32xf32, #tpu.memory_space<vmem>>, %arg15: memref<1x32xf32, #tpu.memory_space<vmem>>, %arg16: memref<1x32xf32, #tpu.memory_space<vmem>>, %arg17: memref<32x64xf32, #tpu.memory_space<vmem>>, %arg18: memref<1x64xf32, #tpu.memory_space<vmem>>, %arg19: memref<32x64xf32, #tpu.memory_space<vmem>>, %arg20: memref<128x128xf32, #tpu.memory_space<vmem>>) attributes {dimension_semantics = [#tpu.dimension_semantics<arbitrary>], iteration_bounds = array<i64: 1>, scalar_prefetch = 0 : i64, scratch_operands = 0 : i64, tpu.core_type = #tpu.core_type<tc>, window_params = [{pipeline_mode = #tpu.pipeline_mode<synchronous>, transform_indices = @transform_0, window_bounds = array<i64: 128, 64>}, {pipeline_mode = #tpu.pipeline_mode<synchronous>, transform_indices = @transform_1, window_bounds = array<i64: 128, 64>}, {pipeline_mode = #tpu.pipeline_mode<synchronous>, transform_indices = @transform_2, window_bounds = array<i64: 128, 1>}, {pipeline_mode = #tpu.pipeline_mode<synchronous>, transform_indices = @transform_3, window_bounds = array<i64: 64, 32>}, {pipeline_mode = #tpu.pipeline_mode<synchronous>, transform_indices = @transform_4, window_bounds = array<i64: 64, 64>}, {pipeline_mode = #tpu.pipeline_mode<synchronous>, transform_indices = @transform_5, window_bounds = array<i64: 1, 96>}, {pipeline_mode = #tpu.pipeline_mode<synchronous>, transform_indices = @transform_6, window_bounds = array<i64: 1, 96>}, {pipeline_mode = #tpu.pipeline_mode<synchronous>, transform_indices = @transform_7, window_bounds = array<i64: 96, 96>}, {pipeline_mode = #tpu.pipeline_mode<synchronous>, transform_indices = @transform_8, window_bounds = array<i64: 96, 96>}, {pipeline_mode = #tpu.pipeline_mode<synchronous>, transform_indices = @transform_9, window_bounds = array<i64: 64, 32>}, {pipeline_mode = #tpu.pipeline_mode<synchronous>, transform_indices = @transform_10, window_bounds = array<i64: 32, 32>}, {pipeline_mode = #tpu.pipeline_mode<synchronous>, transform_indices = @transform_11, window_bounds = array<i64: 1, 32>}, {pipeline_mode = #tpu.pipeline_mode<synchronous>, transform_indices = @transform_12, window_bounds = array<i64: 1, 32>}, {pipeline_mode = #tpu.pipeline_mode<synchronous>, transform_indices = @transform_13, window_bounds = array<i64: 32, 32>}, {pipeline_mode = #tpu.pipeline_mode<synchronous>, transform_indices = @transform_14, window_bounds = array<i64: 1, 32>}, {pipeline_mode = #tpu.pipeline_mode<synchronous>, transform_indices = @transform_15, window_bounds = array<i64: 1, 32>}, {pipeline_mode = #tpu.pipeline_mode<synchronous>, transform_indices = @transform_16, window_bounds = array<i64: 32, 64>}, {pipeline_mode = #tpu.pipeline_mode<synchronous>, transform_indices = @transform_17, window_bounds = array<i64: 1, 64>}, {pipeline_mode = #tpu.pipeline_mode<synchronous>, transform_indices = @transform_18, window_bounds = array<i64: 32, 64>}, {pipeline_mode = #tpu.pipeline_mode<synchronous>, transform_indices = @transform_19, window_bounds = array<i64: 128, 128>}]} {
    %c0 = arith.constant 0 : index
    %c0_0 = arith.constant 0 : index
    %0 = vector.load %arg1[%c0, %c0_0] : memref<128x64xf32, #tpu.memory_space<vmem>>, vector<128x64xf32>
    %c0_1 = arith.constant 0 : index
    %c0_2 = arith.constant 0 : index
    %1 = vector.load %arg2[%c0_1, %c0_2] : memref<128x64xf32, #tpu.memory_space<vmem>>, vector<128x64xf32>
    %2 = arith.addf %0, %1 : vector<128x64xf32>
    %c0_3 = arith.constant 0 : index
    %c0_4 = arith.constant 0 : index
    %3 = vector.load %arg10[%c0_3, %c0_4] : memref<64x32xf32, #tpu.memory_space<vmem>>, vector<64x32xf32>
    %cst = arith.constant dense<0.000000e+00> : vector<128x32xf32>
    %4 = tpu.matmul %2, %3, %cst {dimension_numbers = #tpu.dot_dimension_numbers<[1], [0], [0], [1], [0, 0, 1, 1], [], []>} : vector<128x64xf32>, vector<64x32xf32>, vector<128x32xf32> -> vector<128x32xf32>
    %c0_5 = arith.constant 0 : index
    %c0_6 = arith.constant 0 : index
    %5 = vector.load %arg12[%c0_5, %c0_6] : memref<1x32xf32, #tpu.memory_space<vmem>>, vector<1x32xf32>
    %c0_7 = arith.constant 0 : index
    %c0_8 = arith.constant 0 : index
    %6 = vector.load %arg13[%c0_7, %c0_8] : memref<1x32xf32, #tpu.memory_space<vmem>>, vector<1x32xf32>
    %cst_9 = arith.constant dense<0.000000e+00> : vector<32xf32>
    %7 = vector.multi_reduction <add>, %4, %cst_9 [0] : vector<128x32xf32> to vector<32xf32>
    %8 = vector.shape_cast %7 : vector<32xf32> to vector<1x32xf32>
    %cst_10 = arith.constant 1.280000e+02 : f32
    %9 = vector.broadcast %cst_10 : f32 to vector<1x32xf32>
    %10 = arith.divf %8, %9 : vector<1x32xf32>
    %11 = vector.broadcast %10 : vector<1x32xf32> to vector<128x32xf32>
    %12 = arith.subf %4, %11 : vector<128x32xf32>
    %13 = arith.mulf %12, %12 : vector<128x32xf32>
    %cst_11 = arith.constant dense<0.000000e+00> : vector<32xf32>
    %14 = vector.multi_reduction <add>, %13, %cst_11 [0] : vector<128x32xf32> to vector<32xf32>
    %15 = vector.shape_cast %14 : vector<32xf32> to vector<1x32xf32>
    %cst_12 = arith.constant 1.280000e+02 : f32
    %16 = vector.broadcast %cst_12 : f32 to vector<1x32xf32>
    %17 = arith.divf %15, %16 : vector<1x32xf32>
    %cst_13 = arith.constant 9.99999974E-6 : f32
    %18 = vector.broadcast %cst_13 : f32 to vector<1x32xf32>
    %19 = arith.addf %17, %18 : vector<1x32xf32>
    %20 = math.rsqrt %19 : vector<1x32xf32>
    %21 = arith.mulf %5, %20 : vector<1x32xf32>
    %22 = vector.broadcast %21 : vector<1x32xf32> to vector<128x32xf32>
    %23 = arith.mulf %12, %22 : vector<128x32xf32>
    %24 = vector.broadcast %6 : vector<1x32xf32> to vector<128x32xf32>
    %25 = arith.addf %23, %24 : vector<128x32xf32>
    %cst_14 = arith.constant 0.000000e+00 : f32
    %26 = vector.broadcast %cst_14 : f32 to vector<128x32xf32>
    %27 = arith.maximumf %25, %26 : vector<128x32xf32>
    %c0_15 = arith.constant 0 : index
    %c0_16 = arith.constant 0 : index
    %28 = vector.load %arg14[%c0_15, %c0_16] : memref<32x32xf32, #tpu.memory_space<vmem>>, vector<32x32xf32>
    %cst_17 = arith.constant dense<0.000000e+00> : vector<128x32xf32>
    %29 = tpu.matmul %27, %28, %cst_17 {dimension_numbers = #tpu.dot_dimension_numbers<[1], [0], [0], [1], [0, 0, 1, 1], [], []>} : vector<128x32xf32>, vector<32x32xf32>, vector<128x32xf32> -> vector<128x32xf32>
    %c0_18 = arith.constant 0 : index
    %c0_19 = arith.constant 0 : index
    %30 = vector.load %arg19[%c0_18, %c0_19] : memref<32x64xf32, #tpu.memory_space<vmem>>, vector<32x64xf32>
    %cst_20 = arith.constant dense<0.000000e+00> : vector<128x64xf32>
    %31 = tpu.matmul %29, %30, %cst_20 {dimension_numbers = #tpu.dot_dimension_numbers<[1], [0], [0], [1], [0, 0, 1, 1], [], []>} : vector<128x32xf32>, vector<32x64xf32>, vector<128x64xf32> -> vector<128x64xf32>
    %32 = arith.addf %31, %1 : vector<128x64xf32>
    %cst_21 = arith.constant 0.000000e+00 : f32
    %33 = vector.broadcast %cst_21 : f32 to vector<128x64xf32>
    %34 = tpu.concatenate %32, %33 in 1 : vector<128x64xf32>, vector<128x64xf32> -> vector<128x128xf32>
    %c0_22 = arith.constant 0 : index
    %c0_23 = arith.constant 0 : index
    %35 = vector.load %arg20[%c0_22, %c0_23] : memref<128x128xf32, #tpu.memory_space<vmem>>, vector<128x128xf32>
    tpu.vector_store %arg20[%c0_22, %c0_23], %34 {strides = array<i32>} : memref<128x128xf32, #tpu.memory_space<vmem>>, vector<128x128xf32>,
    return
  }
  func.func @transform_0(%arg0: i32) -> (i32, i32) {
    %c0_i32 = arith.constant 0 : i32
    %c0_i32_0 = arith.constant 0 : i32
    %c0_i32_1 = arith.constant 0 : i32
    return %c0_i32, %c0_i32_0 : i32, i32
  }
  func.func @transform_1(%arg0: i32) -> (i32, i32) {
    %c0_i32 = arith.constant 0 : i32
    %c0_i32_0 = arith.constant 0 : i32
    %c0_i32_1 = arith.constant 0 : i32
    return %c0_i32, %c0_i32_0 : i32, i32
  }
  func.func @transform_2(%arg0: i32) -> (i32, i32) {
    %c0_i32 = arith.constant 0 : i32
    %c0_i32_0 = arith.constant 0 : i32
    %c0_i32_1 = arith.constant 0 : i32
    return %c0_i32, %c0_i32_0 : i32, i32
  }
  func.func @transform_3(%arg0: i32) -> (i32, i32) {
    %c0_i32 = arith.constant 0 : i32
    %c0_i32_0 = arith.constant 0 : i32
    %c0_i32_1 = arith.constant 0 : i32
    return %c0_i32, %c0_i32_0 : i32, i32
  }
  func.func @transform_4(%arg0: i32) -> (i32, i32) {
    %c0_i32 = arith.constant 0 : i32
    %c0_i32_0 = arith.constant 0 : i32
    %c0_i32_1 = arith.constant 0 : i32
    return %c0_i32, %c0_i32_0 : i32, i32
  }
  func.func @transform_5(%arg0: i32) -> (i32, i32) {
    %c0_i32 = arith.constant 0 : i32
    %c0_i32_0 = arith.constant 0 : i32
    %c0_i32_1 = arith.constant 0 : i32
    return %c0_i32, %c0_i32_0 : i32, i32
  }
  func.func @transform_6(%arg0: i32) -> (i32, i32) {
    %c0_i32 = arith.constant 0 : i32
    %c0_i32_0 = arith.constant 0 : i32
    %c0_i32_1 = arith.constant 0 : i32
    return %c0_i32, %c0_i32_0 : i32, i32
  }
  func.func @transform_7(%arg0: i32) -> (i32, i32) {
    %c0_i32 = arith.constant 0 : i32
    %c0_i32_0 = arith.constant 0 : i32
    %c0_i32_1 = arith.constant 0 : i32
    return %c0_i32, %c0_i32_0 : i32, i32
  }
  func.func @transform_8(%arg0: i32) -> (i32, i32) {
    %c0_i32 = arith.constant 0 : i32
    %c0_i32_0 = arith.constant 0 : i32
    %c0_i32_1 = arith.constant 0 : i32
    return %c0_i32, %c0_i32_0 : i32, i32
  }
  func.func @transform_9(%arg0: i32) -> (i32, i32) {
    %c0_i32 = arith.constant 0 : i32
    %c0_i32_0 = arith.constant 0 : i32
    %c0_i32_1 = arith.constant 0 : i32
    return %c0_i32, %c0_i32_0 : i32, i32
  }
  func.func @transform_10(%arg0: i32) -> (i32, i32) {
    %c0_i32 = arith.constant 0 : i32
    %c0_i32_0 = arith.constant 0 : i32
    %c0_i32_1 = arith.constant 0 : i32
    return %c0_i32, %c0_i32_0 : i32, i32
  }
  func.func @transform_11(%arg0: i32) -> (i32, i32) {
    %c0_i32 = arith.constant 0 : i32
    %c0_i32_0 = arith.constant 0 : i32
    %c0_i32_1 = arith.constant 0 : i32
    return %c0_i32, %c0_i32_0 : i32, i32
  }
  func.func @transform_12(%arg0: i32) -> (i32, i32) {
    %c0_i32 = arith.constant 0 : i32
    %c0_i32_0 = arith.constant 0 : i32
    %c0_i32_1 = arith.constant 0 : i32
    return %c0_i32, %c0_i32_0 : i32, i32
  }
  func.func @transform_13(%arg0: i32) -> (i32, i32) {
    %c0_i32 = arith.constant 0 : i32
    %c0_i32_0 = arith.constant 0 : i32
    %c0_i32_1 = arith.constant 0 : i32
    return %c0_i32, %c0_i32_0 : i32, i32
  }
  func.func @transform_14(%arg0: i32) -> (i32, i32) {
    %c0_i32 = arith.constant 0 : i32
    %c0_i32_0 = arith.constant 0 : i32
    %c0_i32_1 = arith.constant 0 : i32
    return %c0_i32, %c0_i32_0 : i32, i32
  }
  func.func @transform_15(%arg0: i32) -> (i32, i32) {
    %c0_i32 = arith.constant 0 : i32
    %c0_i32_0 = arith.constant 0 : i32
    %c0_i32_1 = arith.constant 0 : i32
    return %c0_i32, %c0_i32_0 : i32, i32
  }
  func.func @transform_16(%arg0: i32) -> (i32, i32) {
    %c0_i32 = arith.constant 0 : i32
    %c0_i32_0 = arith.constant 0 : i32
    %c0_i32_1 = arith.constant 0 : i32
    return %c0_i32, %c0_i32_0 : i32, i32
  }
  func.func @transform_17(%arg0: i32) -> (i32, i32) {
    %c0_i32 = arith.constant 0 : i32
    %c0_i32_0 = arith.constant 0 : i32
    %c0_i32_1 = arith.constant 0 : i32
    return %c0_i32, %c0_i32_0 : i32, i32
  }
  func.func @transform_18(%arg0: i32) -> (i32, i32) {
    %c0_i32 = arith.constant 0 : i32
    %c0_i32_0 = arith.constant 0 : i32
    %c0_i32_1 = arith.constant 0 : i32
    return %c0_i32, %c0_i32_0 : i32, i32
  }
  func.func @transform_19(%arg0: i32) -> (i32, i32) {
    %c0_i32 = arith.constant 0 : i32
    %c0_i32_0 = arith.constant 0 : i32
    %c0_i32_1 = arith.constant 0 : i32
    return %c0_i32, %c0_i32_0 : i32, i32
  }
}

</mosaic_0001>

<bundles_post_ra>
// kernel: model_forward.1
= control target key start
LH: loop header
LB: loop body
LE: loop exit
PB: predicated region body
PF: predicated region fallthrough
CT: control target
= control target key end

     0   :  { %s1800_s0 = inlined_call_operand.vmem [shape: f32[128,64], index: 0, kind: input, shape index: {}]   ;;  %s1801_s1 = inlined_call_operand.vmem [shape: f32[128,64], index: 1, kind: input, shape index: {}]   ;;  %s1802_s2 = inlined_call_operand.vmem [shape: f32[128,1], index: 2, kind: input, shape index: {}]   ;;  %s1803_s3 = inlined_call_operand.vmem [shape: f32[64,32], index: 3, kind: input, shape index: {}]   ;;  %s1804_s4 = inlined_call_operand.hbm [shape: f32[64,64], index: 4, kind: input, shape index: {}]   ;;  %s1805_s5 = inlined_call_operand.vmem [shape: f32[1,96], index: 5, kind: input, shape index: {}]   ;;  %s1806_s6 = inlined_call_operand.hbm [shape: f32[1,96], index: 6, kind: input, shape index: {}]   ;;  %s1807_s7 = inlined_call_operand.hbm [shape: f32[96,96], index: 7, kind: input, shape index: {}]   ;;  %s1808_s8 = inlined_call_operand.hbm [shape: f32[96,96], index: 8, kind: input, shape index: {}]   ;;  %s1809_s9 = inlined_call_operand.vmem [shape: f32[64,32], index: 9, kind: input, shape index: {}]   ;;  %s1810_s10 = inlined_call_operand.vmem [shape: f32[32,32], index: 10, kind: input, shape index: {}]   ;;  %s1811_s11 = inlined_call_operand.vmem [shape: f32[1,32], index: 11, kind: input, shape index: {}]   ;;  %s1812_s12 = inlined_call_operand.hbm [shape: f32[1,32], index: 12, kind: input, shape index: {}]   ;;  %s1813_s13 = inlined_call_operand.hbm [shape: f32[32,32], index: 13, kind: input, shape index: {}]   ;;  %s1814_s14 = inlined_call_operand.vmem [shape: f32[1,32], index: 14, kind: input, shape index: {}]   ;;  %s1815_s15 = inlined_call_operand.hbm [shape: f32[1,32], index: 15, kind: input, shape index: {}]   ;;  %s1816_s16 = inlined_call_operand.hbm [shape: f32[32,64], index: 16, kind: input, shape index: {}]   ;;  %s1817_s17 = inlined_call_operand.hbm [shape: f32[1,64], index: 17, kind: input, shape index: {}]   ;;  %s1818_s18 = inlined_call_operand.hbm [shape: f32[32,64], index: 18, kind: input, shape index: {}]   ;;  %s1819_s19 = inlined_call_operand.vmem [shape: f32[128,128], index: 19, kind: output, shape index: {}]  }
   0x1   :  { %1822 = sst [smem:[#allocation24_spill]] %s1800_s0 }
   0x2   :  { %1823 = sst [smem:[#allocation25_spill]] %s1801_s1 }
   0x3   :  { %24 = vsyncpa [#allocation3], 0 }
   0x4   :  { %25 = vsyncpa [#allocation5], 0 }
   0x5   :  { %26 = vsyncpa [#allocation8], 0 }
   0x6   :  { %27 = vsyncpa [#allocation11], 0 }
   0x7   :  { %28 = vsyncpa [#allocation14], 0  ;;  %s58_s29 = sshll.u32 %s1806_s6, 4  ;;  %s59_s29 = int_to_ptr.hbm [resolvable:$true] %s58_s29 }
   0x8   :  { %29 = vsyncpa [#allocation17], 0  ;;  %s1174_s0 = smov [#allocation4]   ;;  %s81_s1 = sshll.u32 %s1808_s8, 4  ;;  %s82_s1 = int_to_ptr.hbm [resolvable:$true] %s81_s1 }
   0x9   :  { %s60_s5 = sshll.u32 %s1174_s0, 4  ;;  %s1175_s21 = smov [#allocation7]   ;;  %s61_s5 = int_to_ptr.vmem [resolvable:$true] %s60_s5 }
   0xa   :  { %63 = dma.hbm_to_vmem [thread:$0]  %s59_s29, 16, %s61_s5, [#allocation5]  }
   0xb   :  { %s83_s22 = sshll.u32 %s1175_s21, 4  ;;  %s111_s24 = sshll.u32 %s1813_s13, 4  ;;  %s84_s22 = int_to_ptr.vmem [resolvable:$true] %s83_s22  ;;  %s112_s24 = int_to_ptr.hbm [resolvable:$true] %s111_s24 }
   0xc   :  { %s1176_s6 = smov 128   ;;  %s1177_s10 = smov 8  }
   0xd   :  { %89 = dma.hbm_to_vmem [thread:$0]  %s82_s1, 1536, %s84_s22, [#allocation8], %s1176_s6, %s1176_s6, %s1177_s10  }
   0xe   :  { %s137_s26 = sshll.u32 %s1816_s16, 4  ;;  %s1178_s8 = smov [#allocation10]   ;;  %s138_s26 = int_to_ptr.hbm [resolvable:$true] %s137_s26 }
   0xf   :  { %s113_s27 = sshll.u32 %s1178_s8, 4  ;;  %s1179_s13 = smov [#allocation13]   ;;  %s114_s27 = int_to_ptr.vmem [resolvable:$true] %s113_s27 }
  0x10   :  { %119 = dma.hbm_to_vmem [thread:$0]  %s112_s24, 512, %s114_s27, [#allocation11], %s1176_s6, %s1176_s6, %s1177_s10  }
  0x11   :  { %s139_s14 = sshll.u32 %s1179_s13, 4  ;;  %s42_s0 = sshll.u32 %s1804_s4, 4  ;;  %s140_s14 = int_to_ptr.vmem [resolvable:$true] %s139_s14  ;;  %s43_s0 = int_to_ptr.hbm [resolvable:$true] %s42_s0 }
  0x12   :  { %145 = dma.hbm_to_vmem [thread:$0]  %s138_s26, 512, %s140_s14, [#allocation14], %s1176_s6, %s1176_s6, %s1177_s10  }
  0x13   :  { %s68_s30 = sshll.u32 %s1807_s7, 4  ;;  %s1180_s20 = smov [#allocation2]   ;;  %s69_s30 = int_to_ptr.hbm [resolvable:$true] %s68_s30 }
  0x14   :  { %s44_s1 = sshll.u32 %s1180_s20, 4  ;;  %s1181_s21 = smov [#allocation6]   ;;  %s45_s1 = int_to_ptr.vmem [resolvable:$true] %s44_s1 }
  0x15   :  { %50 = dma.hbm_to_vmem [thread:$0]  %s43_s0, 1024, %s45_s1, [#allocation3], %s1176_s6, %s1176_s6, %s1177_s10  }
  0x16   :  { %s70_s4 = sshll.u32 %s1181_s21, 4  ;;  %s101_s2 = sshll.u32 %s1812_s12, 4  ;;  %s71_s4 = int_to_ptr.vmem [resolvable:$true] %s70_s4  ;;  %s102_s2 = int_to_ptr.hbm [resolvable:$true] %s101_s2 }
  0x17   :  { %76 = dma.hbm_to_vmem [thread:$0]  %s69_s30, 1536, %s71_s4, [#allocation5], %s1176_s6, %s1176_s6, %s1177_s10  }
  0x18   :  { %s127_s25 = sshll.u32 %s1815_s15, 4  ;;  %s1182_s3 = smov [#allocation9]   ;;  %s128_s25 = int_to_ptr.hbm [resolvable:$true] %s127_s25 }
  0x19   :  { %s103_s26 = sshll.u32 %s1182_s3, 4  ;;  %s1183_s8 = smov [#allocation12]   ;;  %s104_s26 = int_to_ptr.vmem [resolvable:$true] %s103_s26 }
  0x1a   :  { %106 = dma.hbm_to_vmem [thread:$0]  %s102_s2, 16, %s104_s26, [#allocation8]  }
  0x1b   :  { %s129_s27 = sshll.u32 %s1183_s8, 4  ;;  %s151_s12 = sshll.u32 %s1817_s17, 4  ;;  %s130_s27 = int_to_ptr.vmem [resolvable:$true] %s129_s27  ;;  %s152_s12 = int_to_ptr.hbm [resolvable:$true] %s151_s12 }
  0x1c   :  { %132 = dma.hbm_to_vmem [thread:$0]  %s128_s25, 16, %s130_s27, [#allocation11]  }
  0x1d   :  { %s161_s0 = sshll.u32 %s1818_s18, 4  ;;  %s1184_s16 = smov [#allocation15]   ;;  %s162_s0 = int_to_ptr.hbm [resolvable:$true] %s161_s0 }
  0x1e   :  { %s153_s15 = sshll.u32 %s1184_s16, 4  ;;  %s1185_s5 = smov [#allocation16]   ;;  %s154_s15 = int_to_ptr.vmem [resolvable:$true] %s153_s15 }
  0x1f   :  { %156 = dma.hbm_to_vmem [thread:$0]  %s152_s12, 16, %s154_s15, [#allocation14]  }
  0x20   :  { %s163_s30 = sshll.u32 %s1185_s5, 4  ;;  %s164_s30 = int_to_ptr.vmem [resolvable:$true] %s163_s30 }
  0x21   :  { %169 = dma.hbm_to_vmem [thread:$0]  %s162_s0, 512, %s164_s30, [#allocation17], %s1176_s6, %s1176_s6, %s1177_s10  }
  0x22   :  { %1162 = dma.done.wait [#allocation3], 1024  }
  0x23   :  { %1163 = vsyncadd [#allocation3], 4294966272 }
  0x24   :  { %1164 = dma.done.wait [#allocation5], 1552  }
  0x25   :  { %1165 = vsyncadd [#allocation5], 4294965744 }
  0x26   :  { %1166 = dma.done.wait [#allocation8], 1552  }
  0x27   :  { %1167 = vsyncadd [#allocation8], 4294965744 }
  0x28   :  { %1168 = dma.done.wait [#allocation11], 528  }
  0x29   :  { %1169 = vsyncadd [#allocation11], 4294966768 }
  0x2a   :  { %1170 = dma.done.wait [#allocation14], 528  }
  0x2b   :  { %1171 = vsyncadd [#allocation14], 4294966768 }
  0x2c   :  { %1172 = dma.done.wait [#allocation17], 512  }
  0x2d   :  { %1173 = vsyncadd [#allocation17], 4294966784  ;;  %v265_v0 = vld [vmem:[%s1809_s9 + $0x38] sm:$0xff]  ;;  %v264_v1 = vld [vmem:[%s1809_s9 + $0x30] sm:$0xff]  ;;  %s1824_s3 = sld [smem:[#allocation24_spill]]  ;;  %vm266_vm0 = vcmask 523264  }
  0x2e   :  { %323 = vmatpush.msra.mxu0 %v265_v0  ;;  %888 = vmatpush.msra.mxu3 %v265_v0  ;;  %v263_v2 = vld [vmem:[%s1809_s9 + $0x28] sm:$0xff]  ;;  %v262_v3 = vld [vmem:[%s1809_s9 + $0x20] sm:$0xff]  ;;  %v261_v4 = vld [vmem:[%s1809_s9 + $0x18] sm:$0xff]  ;;  %s1825_s27 = sld [smem:[#allocation25_spill]]  ;;  %vm382_vm1 = vcmask 261120  }
  0x2f   :  { %v260_v5 = vld [vmem:[%s1809_s9 + $0x10] sm:$0xff]  ;;  %v259_v8 = vld [vmem:[%s1809_s9 + $0x8] sm:$0xff]  ;;  %v258_v9 = vld [vmem:[%s1809_s9] sm:$0xff] }
  0x30   :  { %324 = vmatpush.msra.mxu0 %v264_v1  ;;  %889 = vmatpush.msra.mxu3 %v264_v1 }
  0x32   :  { %325 = vmatpush.msra.mxu0 %v263_v2  ;;  %890 = vmatpush.msra.mxu3 %v263_v2 }
  0x33   :  { %v210_v6 = vld [vmem:[%s1824_s3] sm:$0xff]  ;;  %v211_v11 = vld [vmem:[%s1824_s3 + $0x8] sm:$0xff]  ;;  %v212_v14 = vld [vmem:[%s1824_s3 + $0x10] sm:$0xff] }
  0x34   :  { %326 = vmatpush.msra.mxu0 %v262_v3  ;;  %891 = vmatpush.msra.mxu3 %v262_v3  ;;  %v1359_v7 = vld [vmem:[%s1825_s27] sm:$0xff]  ;;  %v1375_v12 = vld [vmem:[%s1825_s27 + $0x8] sm:$0xff]  ;;  %v1385_v15 = vld [vmem:[%s1825_s27 + $0x10] sm:$0xff] }
  0x35   :  { %v242_v10 = vadd.f32 %v1359_v7, %v210_v6  ;;  %v243_v13 = vadd.f32 %v1375_v12, %v211_v11  ;;  %v244_v16 = vadd.f32 %v1385_v15, %v212_v14  ;;  %v213_v17 = vld [vmem:[%s1824_s3 + $0x18] sm:$0xff]  ;;  %v214_v20 = vld [vmem:[%s1824_s3 + $0x20] sm:$0xff]  ;;  %v215_v26 = vld [vmem:[%s1824_s3 + $0x28] sm:$0xff] }
  0x36   :  { %327 = vmatpush.msra.mxu0 %v261_v4  ;;  %892 = vmatpush.msra.mxu3 %v261_v4  ;;  %v1395_v18 = vld [vmem:[%s1825_s27 + $0x18] sm:$0xff]  ;;  %v1405_v21 = vld [vmem:[%s1825_s27 + $0x20] sm:$0xff]  ;;  %v1424_v27 = vld [vmem:[%s1825_s27 + $0x28] sm:$0xff] }
  0x37   :  { %v245_v19 = vadd.f32 %v1395_v18, %v213_v17  ;;  %v246_v22 = vadd.f32 %v1405_v21, %v214_v20  ;;  %v222_v23 = vld [vmem:[%s1824_s3 + $0x60] sm:$0xff]  ;;  %v247_v28 = vadd.f32 %v1424_v27, %v215_v26  ;;  %v223_v29 = vld [vmem:[%s1824_s3 + $0x68] sm:$0xff]  ;;  %v216_v32 = vld [vmem:[%s1824_s3 + $0x30] sm:$0xff] }
  0x38   :  { %328 = vmatpush.msra.mxu0 %v260_v5  ;;  %893 = vmatpush.msra.mxu3 %v260_v5  ;;  %v1414_v24 = vld [vmem:[%s1825_s27 + $0x60] sm:$0xff]  ;;  %v1434_v30 = vld [vmem:[%s1825_s27 + $0x68] sm:$0xff]  ;;  %v1444_v33 = vld [vmem:[%s1825_s27 + $0x30] sm:$0xff] }
  0x39   :  { %v254_v25 = vadd.f32 %v1414_v24, %v222_v23  ;;  %v255_v31 = vadd.f32 %v1434_v30, %v223_v29  ;;  %v248_v34 = vadd.f32 %v1444_v33, %v216_v32  ;;  %v224_v35 = vld [vmem:[%s1824_s3 + $0x70] sm:$0xff]  ;;  %v217_v38 = vld [vmem:[%s1824_s3 + $0x38] sm:$0xff]  ;;  %v218_v44 = vld [vmem:[%s1824_s3 + $0x40] sm:$0xff]  ;;  %v1186_v32 = vmov 128.0  }
  0x3a   :  { %329 = vmatpush.msra.mxu0 %v259_v8  ;;  %894 = vmatpush.msra.mxu3 %v259_v8  ;;  %v1454_v36 = vld [vmem:[%s1825_s27 + $0x70] sm:$0xff]  ;;  %v1464_v39 = vld [vmem:[%s1825_s27 + $0x38] sm:$0xff]  ;;  %v1484_v45 = vld [vmem:[%s1825_s27 + $0x40] sm:$0xff]  ;;  %918 = vrcp.f32 %v1186_v32 }
  0x3b   :  { %v256_v37 = vadd.f32 %v1454_v36, %v224_v35  ;;  %v249_v40 = vadd.f32 %v1464_v39, %v217_v38  ;;  %v225_v41 = vld [vmem:[%s1824_s3 + $0x78] sm:$0xff]  ;;  %v250_v46 = vadd.f32 %v1484_v45, %v218_v44  ;;  %v219_v47 = vld [vmem:[%s1824_s3 + $0x48] sm:$0xff]  ;;  %v220_v50 = vld [vmem:[%s1824_s3 + $0x50] sm:$0xff] }
  0x3c   :  { %330 = vmatpush.msra.mxu0 %v258_v9  ;;  %895 = vmatpush.msra.mxu3 %v258_v9  ;;  %v1474_v42 = vld [vmem:[%s1825_s27 + $0x78] sm:$0xff]  ;;  %v1495_v48 = vld [vmem:[%s1825_s27 + $0x48] sm:$0xff]  ;;  %v1505_v51 = vld [vmem:[%s1825_s27 + $0x50] sm:$0xff] }
  0x3d   :  { %840 = vmatmul.msk.f32.vlgmr.msra.gmra.mxu0 %vm266_vm0, %v242_v10  ;;  %852 = vmatmul.msk.f32.vlgmr.msra.gmra.mxu3 %vm266_vm0, %v254_v25  ;;  %v257_v43 = vadd.f32 %v1474_v42, %v225_v41  ;;  %v251_v49 = vadd.f32 %v1495_v48, %v219_v47  ;;  %v252_v52 = vadd.f32 %v1505_v51, %v220_v50  ;;  %v221_v53 = vld [vmem:[%s1824_s3 + $0x58] sm:$0xff] }
  0x3e   :  { %v1515_v54 = vld [vmem:[%s1825_s27 + $0x58] sm:$0xff] }
  0x3f   :  { %v253_v55 = vadd.f32 %v1515_v54, %v221_v53 }
  0x40   :  { %v919_v41 = vpop.eup %918 }
  0x41   :  { %v421_v50 = vmul.f32 128.0, %v919_v41  ;;  %vm425_vm2 = vweird.f32 %v919_v41 }
  0x45   :  { %841 = vmatmul.msk.f32.gmra.mxu0 %vm266_vm0, %v243_v13  ;;  %853 = vmatmul.msk.f32.gmra.mxu3 %vm266_vm0, %v255_v31 }
  0x4d   :  { %842 = vmatmul.msk.f32.gmra.mxu0 %vm266_vm0, %v244_v16  ;;  %854 = vmatmul.msk.f32.gmra.mxu3 %vm266_vm0, %v256_v37 }
  0x55   :  { %843 = vmatmul.msk.f32.gmra.mxu0 %vm266_vm0, %v245_v19  ;;  %855 = vmatmul.msk.f32.gmra.mxu3 %vm266_vm0, %v257_v43 }
  0x5d   :  { %844 = vmatmul.msk.f32.gmra.mxu0 %vm266_vm0, %v246_v22 }
  0x65   :  { %845 = vmatmul.msk.f32.gmra.mxu0 %vm266_vm0, %v247_v28 }
  0x6d   :  { %846 = vmatmul.msk.f32.gmra.mxu0 %vm266_vm0, %v248_v34 }
  0x75   :  { %847 = vmatmul.msk.f32.gmra.mxu0 %vm266_vm0, %v249_v40 }
  0x7d   :  { %848 = vmatmul.msk.f32.gmra.mxu0 %vm266_vm0, %v250_v46 }
  0x85   :  { %849 = vmatmul.msk.f32.gmra.mxu0 %vm266_vm0, %v251_v49 }
  0x8d   :  { %850 = vmatmul.msk.f32.gmra.mxu0 %vm266_vm0, %v252_v52 }
  0x95   :  { %851 = vmatmul.msk.f32.gmra.mxu0 %vm266_vm0, %v253_v55 }
  0xba   :  { %v1519_v56 = vpop.f32.mrf.mxu0 }
  0xbb   :  { %v383_v3 = vsel %vm382_vm1, %v1519_v56, 0.0 }
  0xc0   :  { %v1535_v0 = vpop.f32.mrf.mxu3 }
  0xc1   :  { %v406_v44 = vsel %vm382_vm1, %v1535_v0, 0.0 }
  0xc2   :  { %v1521_v57 = vpop.f32.mrf.mxu0 }
  0xc3   :  { %v384_v2 = vsel %vm382_vm1, %v1521_v57, 0.0 }
  0xc4   :  { %v385_v5 = vadd.f32 %v384_v2, %v383_v3  ;;  %v422_v3 = vsub.f32 1.0, %v421_v50 }
  0xc8   :  { %v1549_v10 = vpop.f32.mrf.mxu3 }
  0xc9   :  { %v408_v49 = vsel %vm382_vm1, %v1549_v10, 0.0 }
  0xca   :  { %v1523_v58 = vpop.f32.mrf.mxu0 }
  0xcb   :  { %v386_v4 = vsel %vm382_vm1, %v1523_v58, 0.0 }
  0xcc   :  { %v387_v8 = vadd.f32 %v386_v4, %v385_v5 }
  0xd0   :  { %v1563_v28 = vpop.f32.mrf.mxu3 }
  0xd1   :  { %v410_v53 = vsel %vm382_vm1, %v1563_v28, 0.0 }
  0xd2   :  { %v1525_v59 = vpop.f32.mrf.mxu0 }
  0xd3   :  { %v388_v6 = vsel %vm382_vm1, %v1525_v59, 0.0 }
  0xd4   :  { %v389_v13 = vadd.f32 %v388_v6, %v387_v8  ;;  %v423_v6 = vmul.f32 %v919_v41, %v422_v3 }
  0xd8   :  { %v1572_v47 = vpop.f32.mrf.mxu3 }
  0xd9   :  { %v412_v55 = vsel %vm382_vm1, %v1572_v47, 0.0 }
  0xda   :  { %v1527_v60 = vpop.f32.mrf.mxu0 }
  0xdb   :  { %v390_v11 = vsel %vm382_vm1, %v1527_v60, 0.0 }
  0xdc   :  { %v391_v16 = vadd.f32 %v390_v11, %v389_v13  ;;  %v424_v13 = vadd.f32 %v919_v41, %v423_v6 }
  0xe2   :  { %v1529_v61 = vpop.f32.mrf.mxu0 }
  0xe3   :  { %v392_v14 = vsel %vm382_vm1, %v1529_v61, 0.0 }
  0xe4   :  { %v393_v19 = vadd.f32 %v392_v14, %v391_v16 }
  0xea   :  { %v1531_v62 = vpop.f32.mrf.mxu0 }
  0xeb   :  { %v394_v17 = vsel %vm382_vm1, %v1531_v62, 0.0 }
  0xec   :  { %v395_v22 = vadd.f32 %v394_v17, %v393_v19  ;;  %v1580_v17 = vsel %vm425_vm2, %v919_v41, %v424_v13 }
  0xf2   :  { %v1533_v63 = vpop.f32.mrf.mxu0 }
  0xf3   :  { %v396_v20 = vsel %vm382_vm1, %v1533_v63, 0.0 }
  0xf4   :  { %v397_v26 = vadd.f32 %v396_v20, %v395_v22 }
  0xfa   :  { %v1537_v1 = vpop.f32.mrf.mxu0 }
  0xfb   :  { %v398_v25 = vsel %vm382_vm1, %v1537_v1, 0.0 }
  0xfc   :  { %v399_v31 = vadd.f32 %v398_v25, %v397_v26 }
 0x102   :  { %v1547_v9 = vpop.f32.mrf.mxu0 }
 0x103   :  { %v400_v29 = vsel %vm382_vm1, %v1547_v9, 0.0 }
 0x104   :  { %v401_v35 = vadd.f32 %v400_v29, %v399_v31 }
 0x10a   :  { %v1559_v23 = vpop.f32.mrf.mxu0 }
 0x10b   :  { %v402_v34 = vsel %vm382_vm1, %v1559_v23, 0.0 }
 0x10c   :  { %v403_v37 = vadd.f32 %v402_v34, %v401_v35 }
 0x112   :  { %v365_v38 = vpop.f32.mrf.mxu0 }
 0x113   :  { %v404_v40 = vsel %vm382_vm1, %v365_v38, 0.0 }
 0x114   :  { %v405_v43 = vadd.f32 %v404_v40, %v403_v37 }
 0x116   :  { %v407_v46 = vadd.f32 %v406_v44, %v405_v43 }
 0x118   :  { %v409_v52 = vadd.f32 %v408_v49, %v407_v46 }
 0x11a   :  { %v411_v2 = vadd.f32 %v410_v53, %v409_v52 }
 0x11c   :  { %v413_v4 = vadd.f32 %v412_v55, %v411_v2 }
 0x11e   :  { %v414_v5 = vrot.slane %v413_v4, 4 }
 0x120   :  { %v415_v8 = vadd.f32 %v414_v5, %v413_v4 }
 0x122   :  { %v416_v11 = vrot.slane %v415_v8, 2 }
 0x124   :  { %v417_v14 = vadd.f32 %v416_v11, %v415_v8 }
 0x126   :  { %v418_v16 = vrot.slane %v417_v14, 1 }
 0x128   :  { %v419_v19 = vadd.f32 %v418_v16, %v417_v14 }
 0x12a   :  { %v427_v20 = vmul.f32 %v1580_v17, %v419_v19 }
 0x12c   :  { %v1584_v22 = vsub.f32 %v1519_v56, %v427_v20  ;;  %v1587_v25 = vsub.f32 %v1521_v57, %v427_v20  ;;  %v1590_v26 = vsub.f32 %v1523_v58, %v427_v20  ;;  %v1593_v29 = vsub.f32 %v1525_v59, %v427_v20 }
 0x12d   :  { %v1600_v34 = vsub.f32 %v1527_v60, %v427_v20  ;;  %v1605_v57 = vsub.f32 %v1529_v61, %v427_v20  ;;  %v1612_v40 = vsub.f32 %v1531_v62, %v427_v20  ;;  %v1618_v61 = vsub.f32 %v1533_v63, %v427_v20 }
 0x12e   :  { %v444_v31 = vmul.f32 %v1584_v22, %v1584_v22  ;;  %v445_v32 = vmul.f32 %v1587_v25, %v1587_v25  ;;  %v446_v56 = vmul.f32 %v1590_v26, %v1590_v26  ;;  %v447_v58 = vmul.f32 %v1593_v29, %v1593_v29 }
 0x12f   :  { %v448_v60 = vmul.f32 %v1600_v34, %v1600_v34  ;;  %v449_v44 = vmul.f32 %v1605_v57, %v1605_v57  ;;  %v1624_v50 = vsub.f32 %v1537_v1, %v427_v20  ;;  %v450_v62 = vmul.f32 %v1612_v40, %v1612_v40 }
 0x130   :  { %v460_v59 = vsel %vm382_vm1, %v444_v31, 0.0  ;;  %v461_v35 = vsel %vm382_vm1, %v445_v32, 0.0  ;;  %v463_v41 = vsel %vm382_vm1, %v446_v56, 0.0  ;;  %v465_v46 = vsel %vm382_vm1, %v447_v58, 0.0 }
 0x131   :  { %v462_v37 = vadd.f32 %v461_v35, %v460_v59  ;;  %v467_v52 = vsel %vm382_vm1, %v448_v60, 0.0  ;;  %v1630_v55 = vsub.f32 %v1547_v9, %v427_v20  ;;  %v451_v63 = vmul.f32 %v1618_v61, %v1618_v61 }
 0x132   :  { %v469_v2 = vsel %vm382_vm1, %v449_v44, 0.0  ;;  %v1636_v4 = vsub.f32 %v1559_v23, %v427_v20  ;;  %v452_v1 = vmul.f32 %v1624_v50, %v1624_v50  ;;  %v471_v5 = vsel %vm382_vm1, %v450_v62, 0.0 }
 0x133   :  { %v464_v43 = vadd.f32 %v463_v41, %v462_v37  ;;  %v1641_v8 = vsub.f32 %v365_v38, %v427_v20  ;;  %v453_v9 = vmul.f32 %v1630_v55, %v1630_v55  ;;  %v473_v11 = vsel %vm382_vm1, %v451_v63, 0.0 }
 0x134   :  { %v1647_v14 = vsub.f32 %v1535_v0, %v427_v20  ;;  %v454_v23 = vmul.f32 %v1636_v4, %v1636_v4  ;;  %v475_v16 = vsel %vm382_vm1, %v452_v1, 0.0  ;;  %v441_v31 = vsub.f32 %v1549_v10, %v427_v20 }
 0x135   :  { %v466_v49 = vadd.f32 %v465_v46, %v464_v43  ;;  %v455_v38 = vmul.f32 %v1641_v8, %v1641_v8  ;;  %v477_v32 = vsel %vm382_vm1, %v453_v9, 0.0  ;;  %v442_v58 = vsub.f32 %v1563_v28, %v427_v20 }
 0x136   :  { %v456_v0 = vmul.f32 %v1647_v14, %v1647_v14  ;;  %v479_v59 = vsel %vm382_vm1, %v454_v23, 0.0  ;;  %v1661_v37 = vsub.f32 %v1572_v47, %v427_v20  ;;  %v457_v60 = vmul.f32 %v441_v31, %v441_v31  ;;  %v564_v23 = vld [vmem:[#allocation10] sm:$0xff] }
 0x137   :  { %v468_v53 = vadd.f32 %v467_v52, %v466_v49  ;;  %v481_v10 = vsel %vm382_vm1, %v455_v38, 0.0  ;;  %v458_v43 = vmul.f32 %v442_v58, %v442_v58 }
 0x138   :  { %v483_v44 = vsel %vm382_vm1, %v456_v0, 0.0  ;;  %v459_v28 = vmul.f32 %v1661_v37, %v1661_v37  ;;  %v485_v49 = vsel %vm382_vm1, %v457_v60, 0.0 }
 0x139   :  { %v470_v3 = vadd.f32 %v469_v2, %v468_v53  ;;  %v487_v52 = vsel %vm382_vm1, %v458_v43, 0.0  ;;  %v917_v43 = vld [vmem:[#allocation9] ss:$0 sm:$0xff] }
 0x13a   :  { %v489_v47 = vsel %vm382_vm1, %v459_v28, 0.0 }
 0x13b   :  { %v472_v6 = vadd.f32 %v471_v5, %v470_v3  ;;  %v567_v5 = vld [vmem:[#allocation10 + $0x18] sm:$0xff] }
 0x13c   :  { %628 = vmatpush.msra.mxu1 %v567_v5  ;;  %896 = vmatpush.msrb.mxu3 %v567_v5 }
 0x13d   :  { %v474_v13 = vadd.f32 %v473_v11, %v472_v6  ;;  %v566_v6 = vld [vmem:[#allocation10 + $0x10] sm:$0xff]  ;;  %v565_v11 = vld [vmem:[#allocation10 + $0x8] sm:$0xff] }
 0x13e   :  { %629 = vmatpush.msra.mxu1 %v566_v6  ;;  %897 = vmatpush.msrb.mxu3 %v566_v6 }
 0x13f   :  { %v476_v19 = vadd.f32 %v475_v16, %v474_v13 }
 0x140   :  { %630 = vmatpush.msra.mxu1 %v565_v11  ;;  %898 = vmatpush.msrb.mxu3 %v565_v11 }
 0x141   :  { %v478_v56 = vadd.f32 %v477_v32, %v476_v19 }
 0x142   :  { %631 = vmatpush.msra.mxu1 %v564_v23  ;;  %899 = vmatpush.msrb.mxu3 %v564_v23 }
 0x143   :  { %v480_v35 = vadd.f32 %v479_v59, %v478_v56 }
 0x145   :  { %v482_v41 = vadd.f32 %v481_v10, %v480_v35  ;;  %v380_v35 = vld [vmem:[%s1811_s11] sm:$0x1] }
 0x147   :  { %v484_v46 = vadd.f32 %v483_v44, %v482_v41 }
 0x149   :  { %v486_v62 = vadd.f32 %v485_v49, %v484_v46 }
 0x14b   :  { %v488_v53 = vadd.f32 %v487_v52, %v486_v62 }
 0x14d   :  { %v490_v20 = vadd.f32 %v489_v47, %v488_v53 }
 0x14f   :  { %v491_v63 = vrot.slane %v490_v20, 4 }
 0x151   :  { %v492_v2 = vadd.f32 %v491_v63, %v490_v20 }
 0x153   :  { %v493_v3 = vrot.slane %v492_v2, 2 }
 0x155   :  { %v494_v1 = vadd.f32 %v493_v3, %v492_v2 }
 0x157   :  { %v495_v9 = vrot.slane %v494_v1, 1 }
 0x159   :  { %v496_v13 = vadd.f32 %v495_v9, %v494_v1 }
 0x15b   :  { %v497_v16 = vmul.f32 %v496_v13, %v1580_v17 }
 0x15d   :  { %v498_v19 = vadd.f32 1e-05, %v497_v16 }
 0x15f   :  { %920 = vrsqrt.f32 %v498_v19  ;;  %vm505_vm4 = vweird.f32 %v498_v19 }
 0x165   :  { %v921_v38 = vpop.eup %920 }
 0x166   :  { %v500_v32 = vmul.f32 %v921_v38, %v498_v19  ;;  %vm506_vm3 = vweird.f32 %v921_v38 }
 0x167   :  { %vm507_vm5 = vmor %vm505_vm4, %vm506_vm3 }
 0x168   :  { %v501_v56 = vmul.f32 %v921_v38, %v500_v32 }
 0x16a   :  { %v502_v0 = vmul.f32 0.5, %v501_v56 }
 0x16c   :  { %v503_v59 = vsub.f32 1.5, %v502_v0 }
 0x16e   :  { %v504_v60 = vmul.f32 %v921_v38, %v503_v59 }
 0x170   :  { %v508_v10 = vsel %vm507_vm5, %v921_v38, %v504_v60 }
 0x171   :  { %v509_v41 = vmul.f32 %v508_v10, %v380_v35 }
 0x173   :  { %v511_v17 = vperm.slane %v509_v41, 0 }
 0x175   :  { %v513_v44 = vmul.f32 %v511_v17, %v1584_v22  ;;  %v526_v46 = vmul.f32 %v511_v17, %v441_v31  ;;  %v514_v53 = vmul.f32 %v511_v17, %v1587_v25  ;;  %v527_v47 = vmul.f32 %v511_v17, %v442_v58 }
 0x176   :  { %v521_v20 = vmul.f32 %v511_v17, %v1624_v50  ;;  %v522_v63 = vmul.f32 %v511_v17, %v1630_v55  ;;  %v523_v2 = vmul.f32 %v511_v17, %v1636_v4  ;;  %v524_v22 = vmul.f32 %v511_v17, %v1641_v8 }
 0x177   :  { %v532_v28 = vadd.f32 %v917_v43, %v513_v44  ;;  %v545_v49 = vadd.f32 %v917_v43, %v526_v46  ;;  %v533_v31 = vadd.f32 %v917_v43, %v514_v53  ;;  %v546_v3 = vadd.f32 %v917_v43, %v527_v47  ;;  %v683_v46 = vld [vmem:[#allocation16 + $0x10] sm:$0xff] }
 0x178   :  { %v525_v1 = vmul.f32 %v511_v17, %v1647_v14  ;;  %v540_v5 = vadd.f32 %v917_v43, %v521_v20  ;;  %v541_v6 = vadd.f32 %v917_v43, %v522_v63  ;;  %v542_v25 = vadd.f32 %v917_v43, %v523_v2 }
 0x179   :  { %v548_v62 = vmax.f32 %v532_v28, 0.0  ;;  %v561_v52 = vmax.f32 %v545_v49, 0.0  ;;  %v543_v58 = vadd.f32 %v917_v43, %v524_v22  ;;  %v528_v11 = vmul.f32 %v511_v17, %v1661_v37 }
 0x17a   :  { %v544_v9 = vadd.f32 %v917_v43, %v525_v1  ;;  %v549_v13 = vmax.f32 %v533_v31, 0.0  ;;  %v562_v23 = vmax.f32 %v546_v3, 0.0  ;;  %v515_v50 = vmul.f32 %v511_v17, %v1590_v26 }
 0x17b   :  { %856 = vmatmul.msk.f32.vlgmr.msra.gmra.mxu1 %vm382_vm1, %v548_v62  ;;  %869 = vmatmul.msk.f32.vlgmr.msrb.gmra.mxu3 %vm382_vm1, %v561_v52  ;;  %v547_v4 = vadd.f32 %v917_v43, %v528_v11  ;;  %v516_v14 = vmul.f32 %v511_v17, %v1593_v29  ;;  %v517_v38 = vmul.f32 %v511_v17, %v1600_v34  ;;  %v556_v44 = vmax.f32 %v540_v5, 0.0 }
 0x17c   :  { %v534_v55 = vadd.f32 %v917_v43, %v515_v50  ;;  %v518_v56 = vmul.f32 %v511_v17, %v1605_v57  ;;  %v519_v29 = vmul.f32 %v511_v17, %v1612_v40  ;;  %v520_v10 = vmul.f32 %v511_v17, %v1618_v61  ;;  %v684_v57 = vld [vmem:[#allocation16 + $0x18] sm:$0xff]  ;;  %v682_v40 = vld [vmem:[#allocation16 + $0x8] sm:$0xff] }
 0x17d   :  { %v563_v16 = vmax.f32 %v547_v4, 0.0  ;;  %v535_v19 = vadd.f32 %v917_v43, %v516_v14  ;;  %v536_v26 = vadd.f32 %v917_v43, %v517_v38  ;;  %745 = vmatpush.msra.mxu2 %v684_v57  ;;  %900 = vmatpush.msra.mxu3 %v684_v57  ;;  %v557_v28 = vmax.f32 %v541_v6, 0.0 }
 0x17e   :  { %v550_v8 = vmax.f32 %v534_v55, 0.0  ;;  %v537_v0 = vadd.f32 %v917_v43, %v518_v56  ;;  %v538_v35 = vadd.f32 %v917_v43, %v519_v29  ;;  %v539_v34 = vadd.f32 %v917_v43, %v520_v10  ;;  %v681_v43 = vld [vmem:[#allocation16] sm:$0xff] }
 0x17f   :  { %v551_v37 = vmax.f32 %v535_v19, 0.0  ;;  %v552_v32 = vmax.f32 %v536_v26, 0.0  ;;  %746 = vmatpush.msra.mxu2 %v683_v46  ;;  %901 = vmatpush.msra.mxu3 %v683_v46  ;;  %v558_v61 = vmax.f32 %v542_v25, 0.0  ;;  %v559_v17 = vmax.f32 %v543_v58, 0.0 }
 0x180   :  { %v553_v59 = vmax.f32 %v537_v0, 0.0  ;;  %v554_v60 = vmax.f32 %v538_v35, 0.0  ;;  %v555_v41 = vmax.f32 %v539_v34, 0.0  ;;  %v560_v49 = vmax.f32 %v544_v9, 0.0 }
 0x181   :  { %747 = vmatpush.msra.mxu2 %v682_v40  ;;  %902 = vmatpush.msra.mxu3 %v682_v40 }
 0x183   :  { %857 = vmatmul.msk.f32.gmra.mxu1 %vm382_vm1, %v549_v13  ;;  %870 = vmatmul.msk.f32.gmra.mxu3 %vm382_vm1, %v562_v23 }
 0x184   :  { %748 = vmatpush.msra.mxu2 %v681_v43  ;;  %903 = vmatpush.msra.mxu3 %v681_v43 }
 0x18b   :  { %858 = vmatmul.msk.f32.gmra.mxu1 %vm382_vm1, %v550_v8  ;;  %871 = vmatmul.msk.f32.gmra.mxu3 %vm382_vm1, %v563_v16 }
 0x193   :  { %859 = vmatmul.msk.f32.gmra.mxu1 %vm382_vm1, %v551_v37 }
 0x19b   :  { %860 = vmatmul.msk.f32.gmra.mxu1 %vm382_vm1, %v552_v32 }
 0x1a3   :  { %861 = vmatmul.msk.f32.gmra.mxu1 %vm382_vm1, %v553_v59 }
 0x1ab   :  { %862 = vmatmul.msk.f32.gmra.mxu1 %vm382_vm1, %v554_v60 }
 0x1b3   :  { %863 = vmatmul.msk.f32.gmra.mxu1 %vm382_vm1, %v555_v41 }
 0x1bb   :  { %864 = vmatmul.msk.f32.gmra.mxu1 %vm382_vm1, %v556_v44 }
 0x1c3   :  { %865 = vmatmul.msk.f32.gmra.mxu1 %vm382_vm1, %v557_v28 }
 0x1cb   :  { %866 = vmatmul.msk.f32.gmra.mxu1 %vm382_vm1, %v558_v61 }
 0x1d3   :  { %867 = vmatmul.msk.f32.gmra.mxu1 %vm382_vm1, %v559_v17 }
 0x1db   :  { %868 = vmatmul.msk.f32.gmra.mxu1 %vm382_vm1, %v560_v49 }
 0x1f8   :  { %v633_v62 = vpop.f32.mrf.mxu1 }
 0x1f9   :  { %872 = vmatmul.msk.f32.vlgmr.msra.gmra.mxu2 %vm382_vm1, %v633_v62 }
 0x1fe   :  { %v672_v52 = vpop.f32.mrf.mxu3 }
 0x1ff   :  { %885 = vmatmul.msk.f32.vlgmr.msra.gmra.mxu3 %vm382_vm1, %v672_v52 }
 0x200   :  { %v636_v53 = vpop.f32.mrf.mxu1 }
 0x201   :  { %873 = vmatmul.msk.f32.gmra.mxu2 %vm382_vm1, %v636_v53 }
 0x206   :  { %v675_v47 = vpop.f32.mrf.mxu3 }
 0x207   :  { %886 = vmatmul.msk.f32.gmra.mxu3 %vm382_vm1, %v675_v47 }
 0x208   :  { %v639_v20 = vpop.f32.mrf.mxu1 }
 0x209   :  { %874 = vmatmul.msk.f32.gmra.mxu2 %vm382_vm1, %v639_v20 }
 0x20e   :  { %v678_v63 = vpop.f32.mrf.mxu3 }
 0x20f   :  { %887 = vmatmul.msk.f32.gmra.mxu3 %vm382_vm1, %v678_v63 }
 0x210   :  { %v642_v2 = vpop.f32.mrf.mxu1 }
 0x211   :  { %875 = vmatmul.msk.f32.gmra.mxu2 %vm382_vm1, %v642_v2 }
 0x218   :  { %v645_v22 = vpop.f32.mrf.mxu1 }
 0x219   :  { %876 = vmatmul.msk.f32.gmra.mxu2 %vm382_vm1, %v645_v22 }
 0x220   :  { %v648_v31 = vpop.f32.mrf.mxu1 }
 0x221   :  { %877 = vmatmul.msk.f32.gmra.mxu2 %vm382_vm1, %v648_v31 }
 0x228   :  { %v651_v3 = vpop.f32.mrf.mxu1 }
 0x229   :  { %878 = vmatmul.msk.f32.gmra.mxu2 %vm382_vm1, %v651_v3 }
 0x230   :  { %v654_v1 = vpop.f32.mrf.mxu1 }
 0x231   :  { %879 = vmatmul.msk.f32.gmra.mxu2 %vm382_vm1, %v654_v1 }
 0x238   :  { %v657_v5 = vpop.f32.mrf.mxu1 }
 0x239   :  { %880 = vmatmul.msk.f32.gmra.mxu2 %vm382_vm1, %v657_v5 }
 0x240   :  { %v660_v6 = vpop.f32.mrf.mxu1 }
 0x241   :  { %881 = vmatmul.msk.f32.gmra.mxu2 %vm382_vm1, %v660_v6 }
 0x248   :  { %v663_v25 = vpop.f32.mrf.mxu1 }
 0x249   :  { %882 = vmatmul.msk.f32.gmra.mxu2 %vm382_vm1, %v663_v25 }
 0x250   :  { %v666_v58 = vpop.f32.mrf.mxu1 }
 0x251   :  { %883 = vmatmul.msk.f32.gmra.mxu2 %vm382_vm1, %v666_v58 }
 0x258   :  { %v669_v9 = vpop.f32.mrf.mxu1 }
 0x259   :  { %884 = vmatmul.msk.f32.gmra.mxu2 %vm382_vm1, %v669_v9 }
 0x27c   :  { %v750_v11 = vpop.f32.mrf.mxu2 }
 0x27d   :  { %v751_v13 = vadd.f32 %v750_v11, %v1359_v7 }
 0x27f   :  { %v798_v23 = vsel %vm266_vm0, %v751_v13, 0.0 }
 0x280   :  { %814 = vst [vmem:[%s1819_s19] sm:$0xff] %v798_v23 }
 0x282   :  { %v789_v50 = vpop.f32.mrf.mxu3 }
 0x283   :  { %v790_v55 = vadd.f32 %v789_v50, %v1434_v30 }
 0x284   :  { %v753_v4 = vpop.f32.mrf.mxu2 }
 0x285   :  { %v811_v8 = vsel %vm266_vm0, %v790_v55, 0.0  ;;  %v754_v16 = vadd.f32 %v753_v4, %v1375_v12 }
 0x286   :  { %827 = vst [vmem:[%s1819_s19 + $0x68] sm:$0xff] %v811_v8 }
 0x287   :  { %v799_v7 = vsel %vm266_vm0, %v754_v16, 0.0 }
 0x288   :  { %815 = vst [vmem:[%s1819_s19 + $0x8] sm:$0xff] %v799_v7 }
 0x28a   :  { %v792_v14 = vpop.f32.mrf.mxu3 }
 0x28b   :  { %v793_v19 = vadd.f32 %v792_v14, %v1454_v36 }
 0x28c   :  { %v756_v37 = vpop.f32.mrf.mxu2 }
 0x28d   :  { %v812_v30 = vsel %vm266_vm0, %v793_v19, 0.0  ;;  %v757_v38 = vadd.f32 %v756_v37, %v1385_v15 }
 0x28e   :  { %828 = vst [vmem:[%s1819_s19 + $0x70] sm:$0xff] %v812_v30 }
 0x28f   :  { %v800_v12 = vsel %vm266_vm0, %v757_v38, 0.0 }
 0x290   :  { %816 = vst [vmem:[%s1819_s19 + $0x10] sm:$0xff] %v800_v12 }
 0x292   :  { %v795_v26 = vpop.f32.mrf.mxu3 }
 0x293   :  { %v796_v32 = vadd.f32 %v795_v26, %v1474_v42 }
 0x294   :  { %v759_v56 = vpop.f32.mrf.mxu2 }
 0x295   :  { %v813_v36 = vsel %vm266_vm0, %v796_v32, 0.0  ;;  %v760_v0 = vadd.f32 %v759_v56, %v1395_v18 }
 0x296   :  { %829 = vst [vmem:[%s1819_s19 + $0x78] sm:$0xff] %v813_v36 }
 0x297   :  { %v801_v15 = vsel %vm266_vm0, %v760_v0, 0.0 }
 0x298   :  { %817 = vst [vmem:[%s1819_s19 + $0x18] sm:$0xff] %v801_v15 }
 0x29c   :  { %v762_v59 = vpop.f32.mrf.mxu2 }
 0x29d   :  { %v763_v29 = vadd.f32 %v762_v59, %v1405_v21 }
 0x29f   :  { %v802_v42 = vsel %vm266_vm0, %v763_v29, 0.0 }
 0x2a0   :  { %818 = vst [vmem:[%s1819_s19 + $0x20] sm:$0xff] %v802_v42 }
 0x2a4   :  { %v765_v18 = vpop.f32.mrf.mxu2 }
 0x2a5   :  { %v766_v35 = vadd.f32 %v765_v18, %v1424_v27 }
 0x2a7   :  { %v803_v60 = vsel %vm266_vm0, %v766_v35, 0.0 }
 0x2a8   :  { %819 = vst [vmem:[%s1819_s19 + $0x28] sm:$0xff] %v803_v60 }
 0x2ac   :  { %v768_v10 = vpop.f32.mrf.mxu2 }
 0x2ad   :  { %v769_v34 = vadd.f32 %v768_v10, %v1444_v33 }
 0x2af   :  { %v804_v21 = vsel %vm266_vm0, %v769_v34, 0.0 }
 0x2b0   :  { %820 = vst [vmem:[%s1819_s19 + $0x30] sm:$0xff] %v804_v21 }
 0x2b4   :  { %v771_v41 = vpop.f32.mrf.mxu2 }
 0x2b5   :  { %v772_v44 = vadd.f32 %v771_v41, %v1464_v39 }
 0x2b7   :  { %v805_v27 = vsel %vm266_vm0, %v772_v44, 0.0 }
 0x2b8   :  { %821 = vst [vmem:[%s1819_s19 + $0x38] sm:$0xff] %v805_v27 }
 0x2bc   :  { %v774_v57 = vpop.f32.mrf.mxu2 }
 0x2bd   :  { %v775_v46 = vadd.f32 %v774_v57, %v1484_v45 }
 0x2bf   :  { %v806_v33 = vsel %vm266_vm0, %v775_v46, 0.0 }
 0x2c0   :  { %822 = vst [vmem:[%s1819_s19 + $0x40] sm:$0xff] %v806_v33 }
 0x2c4   :  { %v777_v40 = vpop.f32.mrf.mxu2 }
 0x2c5   :  { %v778_v28 = vadd.f32 %v777_v40, %v1495_v48 }
 0x2c7   :  { %v807_v39 = vsel %vm266_vm0, %v778_v28, 0.0 }
 0x2c8   :  { %823 = vst [vmem:[%s1819_s19 + $0x48] sm:$0xff] %v807_v39 }
 0x2cc   :  { %v780_v61 = vpop.f32.mrf.mxu2 }
 0x2cd   :  { %v781_v17 = vadd.f32 %v780_v61, %v1505_v51 }
 0x2cf   :  { %v808_v45 = vsel %vm266_vm0, %v781_v17, 0.0 }
 0x2d0   :  { %824 = vst [vmem:[%s1819_s19 + $0x50] sm:$0xff] %v808_v45 }
 0x2d4   :  { %v783_v43 = vpop.f32.mrf.mxu2 }
 0x2d5   :  { %v784_v49 = vadd.f32 %v783_v43, %v1515_v54 }
 0x2d7   :  { %v809_v48 = vsel %vm266_vm0, %v784_v49, 0.0 }
 0x2d8   :  { %825 = vst [vmem:[%s1819_s19 + $0x58] sm:$0xff] %v809_v48 }
 0x2dc   :  { %v786_v62 = vpop.f32.mrf.mxu2 }
 0x2dd   :  { %v787_v52 = vadd.f32 %v786_v62, %v1414_v24 }
 0x2df   :  { %v810_v51 = vsel %vm266_vm0, %v787_v52, 0.0 }
 0x2e0   :  { %826 = vst [vmem:[%s1819_s19 + $0x60] sm:$0xff] %v810_v51 }
 0x2e1   :  { %834 = vsyncpa [#allocation3], 1 }
 0x2e2   :  { %835 = vsyncpa [#allocation5], 1 }
 0x2e3   :  { %836 = vsyncpa [#allocation8], 1 }
 0x2e4   :  { %837 = vsyncpa [#allocation11], 1 }
 0x2e5   :  { %838 = vsyncpa [#allocation14], 1 }
 0x2e6   :  { %839 = vsyncpa [#allocation17], 1 }

</bundles_post_ra>
